<compile_context>
chip_gen: v7x
topology: tpu7x:2x2x1
jax: 0.10.0
libtpu: 0.0.40
codegen_flags: <defaults>
</compile_context>

<pallas_src>
import functools

import numpy as np
import jax
import jax.numpy as jnp
from jax.experimental import pallas as pl
from jax.experimental.pallas import tpu as pltpu

WG = 18            # master grid width  (18x18 input)
HG = 18            # master grid height
PER_B = 384        # per-sample lane stride (multiple of 128, >= 18*18 = 324)
K = 3              # conv kernel size
A_ROWS = 9 * 16    # im2col scratch rows (9 taps x max padded Cin)

# layer table: name -> (cin, cin_padded_to_8, grid stride, transposed)
_LAYERS = {
    "conv1":    (3,  8,  1, False),
    "encoder1": (6,  8,  2, False),
    "encoder2": (12, 16, 4, False),
    "decoder2": (16, 16, 4, True),
    "decoder1": (12, 16, 2, True),
    "unconv1":  (6,  8,  1, True),
}

# Master-grid safety margins (see header comment).
assert PER_B % 128 == 0
assert PER_B - (2 * WG + 2) >= HG * WG     # unconv1 wrapped reads land in pad lanes


# --------------------------- roll direction probe ----------------------------

_ROLL_SIGN = 1          # +1: pltpu.roll == jnp.roll ; -1: opposite direction
_ROLL_DETECTED = False


def _detect_roll_sign():
    """Run a tiny eager kernel once to pin down pltpu.roll's rotation direction."""
    global _ROLL_SIGN, _ROLL_DETECTED
    if _ROLL_DETECTED:
        return _ROLL_SIGN

    def probe(x_ref, o_ref):
        o_ref[...] = pltpu.roll(x_ref[...], 1, axis=1)

    x = jax.lax.broadcasted_iota(jnp.float32, (8, 128), 1)
    y = pl.pallas_call(
        probe, out_shape=jax.ShapeDtypeStruct((8, 128), jnp.float32))(x)
    # jnp.roll semantics: out[0,0] == x[0,127] == 127 ; opposite: out[0,0] == 1.
    _ROLL_SIGN = 1 if abs(float(y[0, 0]) - 127.0) < 0.5 else -1
    _ROLL_DETECTED = True
    return _ROLL_SIGN


def _roll(x, shift):
    """Cyclic lane shift with numpy semantics: out[..., i] = x[..., (i - shift) % L]."""
    l = x.shape[-1]
    s = (shift * _ROLL_SIGN) % l
    if s == 0:
        return x
    return pltpu.roll(x, s, axis=1)


# --------------------------------- kernel ------------------------------------

def _autoencoder_kernel(masks_ref, x_ref,
                        w1, b1, w2, b2, w3, b3, w4, b4, w5, b5, w6, b6,
                        out_ref, a_ref):
    l = out_ref.shape[-1]
    mp1 = masks_ref[0:1, :]          # valid pool1 anchors   grid (2i,2j), i,j<8
    mp2 = masks_ref[1:2, :]          # valid pool2 anchors   grid (4i,4j), i,j<3
    mcd = masks_ref[2:3, :]          # 1x1 code position     grid (0,0)

    def conv(x, w_ref, b_ref, cin, cinp, stride, transposed):
        """3x3 valid conv / stride-1 transposed conv on the master grid.
        Tap blocks are sublane-aligned (cinp rows, pad rows written as zeros);
        weights carry matching zero columns."""
        if cinp > cin:
            xp = jnp.concatenate(
                [x, jnp.zeros((cinp - cin, l), jnp.float32)], axis=0)
        else:
            xp = x
        for di in range(K):
            for dj in range(K):
                t = di * K + dj
                if transposed:
                    # output (i,j) reads input (i-2+di, j-2+dj) -> right shift
                    sh = stride * (WG * (K - 1 - di) + (K - 1 - dj))
                else:
                    # output (i,j) reads input (i+di, j+dj)     -> left shift
                    sh = -stride * (WG * di + dj)
                a_ref[t * cinp:(t + 1) * cinp, :] = _roll(xp, sh)
        y = jnp.dot(w_ref[...], a_ref[0:9 * cinp, :],
                    preferred_element_type=jnp.float32)
        return y + b_ref[...]

    def maxpool(x, stride):
        """2x2/2 max pool on the stride-`stride` lattice.  Pooled values land on
        the window-anchor lanes; argmax is one f32 index plane (0..3, first-hit
        tie break).  Non-anchor lanes hold bounded garbage (masked downstream)."""
        x01 = _roll(x, -stride)
        x10 = _roll(x, -stride * WG)
        x11 = _roll(x, -stride * (WG + 1))
        m = jnp.maximum(jnp.maximum(x, x01), jnp.maximum(x10, x11))
        idx = jnp.where(x == m, 0.0,
              jnp.where(x01 == m, 1.0,
              jnp.where(x10 == m, 2.0, 3.0)))
        return m, idx

    def maxunpool(v, idx, valid, out_stride):
        """Scatter v (on anchor lanes, masked by `valid`) to the argmax position
        of each 2x2 window, rebuilding one-hots from the index plane."""
        vv = v * valid
        out = jnp.where(idx == 0.0, vv, 0.0)
        for t, (di, dj) in ((1, (0, 1)), (2, (1, 0)), (3, (1, 1))):
            p = jnp.where(idx == float(t), vv, 0.0)
            out = out + _roll(p, out_stride * (WG * di + dj))
        return out

    # ------------------------------ encoder -------------------------------
    x0 = x_ref[...]
    y1 = conv(x0, w1, b1, *_LAYERS["conv1"])                       # conv1
    p1, i1 = maxpool(y1, 1)                                        # maxpool1
    y2 = conv(jnp.tanh(p1), w2, b2, *_LAYERS["encoder1"])          # encoder1
    p2, i2 = maxpool(y2, 2)                                        # maxpool2
    y3 = conv(jnp.tanh(p2), w3, b3, *_LAYERS["encoder2"])          # encoder2
    code = jnp.tanh(y3) * mcd              # keep only the 1x1 code position
    # ------------------------------ decoder -------------------------------
    z2 = jnp.tanh(conv(code, w4, b4, *_LAYERS["decoder2"]))        # decoder2
    u2 = maxunpool(z2, i2, mp2, 2)                                 # unmaxunpool2
    z1 = jnp.tanh(conv(u2, w5, b5, *_LAYERS["decoder1"]))          # decoder1
    u1 = maxunpool(z1, i1, mp1, 1)                                 # maxunpool1
    z0 = conv(u1, w6, b6, *_LAYERS["unconv1"])                     # unconv1
    out_ref[...] = jnp.maximum(z0, 0.0)                            # ReLU


# ------------------------------ host wrappers ---------------------------------

def _grid_masks(bt):
    """Per-tile validity masks on the flat master grid (host-built constant):
    row 0 = pool1 anchors, row 1 = pool2 anchors, row 2 = code position."""
    m = np.zeros((3, bt * PER_B), np.float32)
    for b in range(bt):
        base = b * PER_B
        for i in range(8):
            for j in range(8):
                m[0, base + 2 * i * WG + 2 * j] = 1.0
        for i in range(3):
            for j in range(3):
                m[1, base + 4 * i * WG + 4 * j] = 1.0
        m[2, base] = 1.0
    return m


def autoencoder_forward(params, x, samples_per_step=8):
    """x: (B, 3, 18, 18) float32 NCHW -> (B, 3, 18, 18) float32."""
    batch = x.shape[0]
    bt = min(samples_per_step, batch)
    while batch % bt:
        bt -= 1
    nb = batch // bt
    l = bt * PER_B

    # TODO(synk): fold this NCHW <-> master-grid packing into the kernel itself;
    # kept in XLA (same jit) because the (18,18)->(324,) in-kernel relayout is
    # lowering-fragile for non-tile-aligned shapes.
    xg = jnp.transpose(x, (1, 0, 2, 3)).reshape(3, batch, HG * WG)
    xg = jnp.pad(xg, ((0, 0), (0, 0), (0, PER_B - HG * WG)))
    xg = xg.reshape(3, batch * PER_B)

    masks = jnp.asarray(_grid_masks(bt))

    wl = []
    for name in ("conv1", "encoder1", "encoder2", "decoder2", "decoder1",
                 "unconv1"):
        wl += [params[name][0], params[name][1]]

    in_specs = [pl.BlockSpec((3, l), lambda i: (0, 0)),     # masks (same each step)
                pl.BlockSpec((3, l), lambda i: (0, i))]     # input batch tile
    in_specs += [pl.BlockSpec(w.shape, lambda i: (0, 0)) for w in wl]

    out_flat = pl.pallas_call(
        _autoencoder_kernel,
        grid=(nb,),
        in_specs=in_specs,
        out_specs=pl.BlockSpec((3, l), lambda i: (0, i)),
        out_shape=jax.ShapeDtypeStruct((3, batch * PER_B), jnp.float32),
        scratch_shapes=[pltpu.VMEM((A_ROWS, l), jnp.float32)],   # im2col matrix
        compiler_params=pltpu.CompilerParams(
            dimension_semantics=("parallel",),
            vmem_limit_bytes=32 * 1024 * 1024),
    )(masks, xg, *wl)

    out = out_flat.reshape(3, batch, PER_B)[:, :, :HG * WG]
    out = out.reshape(3, batch, HG, WG)
    return jnp.transpose(out, (1, 0, 2, 3))


def init_raw_params(key):
    """Random parameters in PyTorch layout:
    Conv2d -> (Cout, Cin, 3, 3), ConvTranspose2d -> (Cin, Cout, 3, 3)."""
    def conv_p(k_, cout, cin):
        kw, kb = jax.random.split(k_)
        w = jax.random.normal(kw, (cout, cin, K, K), jnp.float32) / np.sqrt(cin * K * K)
        b = jax.random.normal(kb, (cout,), jnp.float32) * 0.05
        return w, b

    def convt_p(k_, cin, cout):
        kw, kb = jax.random.split(k_)
        w = jax.random.normal(kw, (cin, cout, K, K), jnp.float32) / np.sqrt(cout * K * K)
        b = jax.random.normal(kb, (cout,), jnp.float32) * 0.05
        return w, b

    ks = jax.random.split(key, 6)
    return {
        "conv1": conv_p(ks[0], 6, 3),
        "encoder1": conv_p(ks[1], 12, 6),
        "encoder2": conv_p(ks[2], 16, 12),
        "decoder2": convt_p(ks[3], 16, 12),
        "decoder1": convt_p(ks[4], 12, 6),
        "unconv1": convt_p(ks[5], 6, 3),
    }


def prepare_params(raw):
    """One-time weight repacking (hoisted out of the forward pass): every conv
    becomes one (Cout, 9*Cin_pad) matrix whose column order matches the in-kernel
    im2col row order (tap-major, channel-minor, channels zero-padded to 8/16);
    transposed convs are pre-flipped."""
    def pack_conv(w, b, cinp):
        cout, cin = w.shape[0], w.shape[1]
        wt = jnp.transpose(w, (0, 2, 3, 1))                      # (Cout,3,3,Cin)
        wt = jnp.pad(wt, ((0, 0), (0, 0), (0, 0), (0, cinp - cin)))
        return wt.reshape(cout, 9 * cinp), b.reshape(cout, 1)

    def pack_convt(w, b, cinp):
        cin, cout = w.shape[0], w.shape[1]
        wf = jnp.flip(w, axis=(2, 3))
        wt = jnp.transpose(wf, (1, 2, 3, 0))                     # (Cout,3,3,Cin)
        wt = jnp.pad(wt, ((0, 0), (0, 0), (0, 0), (0, cinp - cin)))
        return wt.reshape(cout, 9 * cinp), b.reshape(cout, 1)

    out = {}
    for name, (_, cinp, _, transposed) in _LAYERS.items():
        w, b = raw[name]
        out[name] = (pack_convt if transposed else pack_conv)(w, b, cinp)
    return out


# --------------------------- numpy reference model ----------------------------

def _np_conv(x, w, b):
    bs, cin, h, wd = x.shape
    cout = w.shape[0]
    ho, wo = h - 2, wd - 2
    y = np.zeros((bs, cout, ho, wo), np.float64)
    for di in range(K):
        for dj in range(K):
            patch = x[:, :, di:di + ho, dj:dj + wo]
            y += np.einsum("oc,bchw->bohw", w[:, :, di, dj], patch)
    return y + b.reshape(1, cout, 1, 1)


def _np_convt(x, w, b):
    xp = np.pad(x, ((0, 0), (0, 0), (2, 2), (2, 2)))
    wf = w[:, :, ::-1, ::-1].transpose(1, 0, 2, 3)
    return _np_conv(xp, wf, b)


def _np_pool(x):
    bs, c, h, wd = x.shape
    xr = x.reshape(bs, c, h // 2, 2, wd // 2, 2)
    a, b_ = xr[:, :, :, 0, :, 0], xr[:, :, :, 0, :, 1]
    cc, d = xr[:, :, :, 1, :, 0], xr[:, :, :, 1, :, 1]
    m = np.maximum(np.maximum(a, b_), np.maximum(cc, d))
    s0 = a == m
    s1 = ~s0 & (b_ == m)
    s2 = ~(s0 | s1) & (cc == m)
    s3 = ~(s0 | s1 | s2)
    return m, (s0, s1, s2, s3)


def _np_unpool(v, masks):
    bs, c, h, wd = v.shape
    out = np.zeros((bs, c, 2 * h, 2 * wd), v.dtype)
    s0, s1, s2, s3 = masks
    out[:, :, 0::2, 0::2] = v * s0
    out[:, :, 0::2, 1::2] = v * s1
    out[:, :, 1::2, 0::2] = v * s2
    out[:, :, 1::2, 1::2] = v * s3
    return out


def np_reference_forward(raw, x):
    p = {k: (np.asarray(w, np.float64), np.asarray(b, np.float64))
         for k, (w, b) in raw.items()}
    y = _np_conv(np.asarray(x, np.float64), *p["conv1"])
    y, i1 = _np_pool(y)
    y = _np_conv(np.tanh(y), *p["encoder1"])
    y, i2 = _np_pool(y)
    y = np.tanh(_np_conv(np.tanh(y), *p["encoder2"]))
    y = np.tanh(_np_convt(y, *p["decoder2"]))
    y = _np_unpool(y, i2)
    y = np.tanh(_np_convt(y, *p["decoder1"]))
    y = _np_unpool(y, i1)
    y = _np_convt(y, *p["unconv1"])
    return np.maximum(y, 0.0)


if __name__ == "__main__":
    _detect_roll_sign()          # eager probe: must run before the forward traces

    key = jax.random.PRNGKey(0)
    kx, kp = jax.random.split(key)
    x = jax.random.normal(kx, (2, 3, 18, 18), jnp.float32)   # 18x18 NCHW input

    raw = init_raw_params(kp)
    params = prepare_params(raw)              # one-time weight repacking

    fwd = jax.jit(functools.partial(autoencoder_forward, params))
    out = fwd(x)
    jax.block_until_ready(out)
    assert out.shape == (2, 3, 18, 18), out.shape
    assert out.dtype == jnp.float32

    # Correctness check against an independent float64 numpy reference.
    # (Fraction-based tolerance so a measure-zero pooling argmax near-tie
    #  cannot spuriously fail; any real layout/shift/weight bug corrupts far more.)
    ref = np_reference_forward(raw, np.asarray(x))
    diff = np.abs(np.asarray(out, np.float64) - ref)
    assert float(np.mean(diff > 5e-2)) < 0.10, float(np.max(diff))

    print("KERNEL_OK")
</pallas_src>

<mosaic_0001>
module attributes {stable_mosaic.version = 11 : i64} {
  func.func @probe(%arg0: memref<8x128xf32, #tpu.memory_space<vmem>>, %arg1: memref<8x128xf32, #tpu.memory_space<vmem>>) attributes {dimension_semantics = [], scalar_prefetch = 0 : i64, scratch_operands = 0 : i64, tpu.core_type = #tpu.core_type<tc>} {
    %c0 = arith.constant 0 : index
    %c0_0 = arith.constant 0 : index
    %0 = vector.load %arg0[%c0, %c0_0] : memref<8x128xf32, #tpu.memory_space<vmem>>, vector<8x128xf32>
    %c1_i32 = arith.constant 1 : i32
    %1 = tpu.dynamic_rotate %0 by %c1_i32 dim 1 : vector<8x128xf32>, i32 -> vector<8x128xf32>
    %c0_1 = arith.constant 0 : index
    %c0_2 = arith.constant 0 : index
    %2 = vector.load %arg1[%c0_1, %c0_2] : memref<8x128xf32, #tpu.memory_space<vmem>>, vector<8x128xf32>
    tpu.vector_store %arg1[%c0_1, %c0_2], %1 {strides = array<i32>} : memref<8x128xf32, #tpu.memory_space<vmem>>, vector<8x128xf32>,
    return
  }
}

</mosaic_0001>

<bundles_post_ra>
// kernel: tpu_custom_call.1
= control target key start
LH: loop header
LB: loop body
LE: loop exit
PB: predicated region body
PF: predicated region fallthrough
CT: control target
= control target key end

     0   :  { %6 = vsyncpa [#allocation3], 0  ;;  %s128_s0 = inlined_call_operand.hbm [shape: f32[8,128], index: 0, kind: input, shape index: {}]   ;;  %s129_s1 = inlined_call_operand.hbm [shape: f32[8,128], index: 1, kind: output, shape index: {}]  }
   0x1   :  { %7 = vsyncpa [#allocation4], 0  ;;  %s91_s6 = smov [#allocation2]   ;;  %s43_s10 = scalar_lea.hbm %s128_s0, 128 }
   0x2   :  { %s14_s7 = sshll.u32 %s91_s6, 4  ;;  %p44_p0 = scmp.ne.s32.totalorder %s128_s0, %s43_s10  ;;  %s15_s7 = int_to_ptr.vmem [resolvable:$true] %s14_s7 }
   0x3   :  { %p47_p1 = scmp.lt.u32.totalorder %s43_s10, %s128_s0 }
   0x5   :  { %p49_p2 = pnand %p47_p1, %p44_p0 }
   0x7   :  { %52 = shalt.err (!%p49_p2)
}
   0x8   :  { %s53_s15 = scalar_lea.vmem %s15_s7, 128  ;;  %p58_p4 = scmp.lt.s32.totalorder %s15_s7, %s15_s7 }
   0x9   :  { %p54_p3 = scmp.ne.s32.totalorder %s15_s7, %s53_s15  ;;  %p59_p5 = scmp.lt.s32.totalorder %s53_s15, %s53_s15 }
   0xb   :  { %p60_p6 = por %p59_p5, %p58_p4 }
   0xd   :  { %p61_p7 = pnand %p60_p6, %p54_p3 }
   0xf   :  { %64 = shalt.err (!%p61_p7)
}
  0x10   :  { %17 = dma.hbm_to_vmem [thread:$0]  %s128_s0, 128, %s15_s7, [#allocation3]  }
  0x11   :  { %87 = dma.done.wait [#allocation3], 128  }
  0x12   :  { %88 = vsyncadd [#allocation3], 4294967168  ;;  %v21_v0 = vld [vmem:[#allocation2] sm:$0xff]  ;;  %s92_s18 = smov 1   ;;  %s93_s19 = smov [#allocation5]  }
  0x13   :  { %22 = vrot.lane.b32.xlu0 %v21_v0, %s92_s18  ;;  %s31_s20 = sshll.u32 %s93_s19, 4  ;;  %s32_s20 = int_to_ptr.vmem [resolvable:$true] %s31_s20 }
  0x14   :  { %s65_s21 = scalar_lea.vmem %s32_s20, 128  ;;  %p70_p9 = scmp.lt.s32.totalorder %s32_s20, %s32_s20 }
  0x15   :  { %p66_p8 = scmp.ne.s32.totalorder %s32_s20, %s65_s21  ;;  %p71_p10 = scmp.lt.s32.totalorder %s65_s21, %s65_s21 }
  0x17   :  { %p72_p11 = por %p71_p10, %p70_p9 }
  0x19   :  { %p73_p12 = pnand %p72_p11, %p66_p8 }
  0x85   :  { %v23_v1 = vpop.permute.xlu0 %22 }
  0x86   :  { %24 = vst [vmem:[#allocation5] sm:$0xff] %v23_v1 }
  0x87   :  { %76 = shalt.err (!%p73_p12)
}
  0x88   :  { %s77_s0 = scalar_lea.hbm %s129_s1, 128 }
  0x89   :  { %p78_p13 = scmp.ne.s32.totalorder %s129_s1, %s77_s0  ;;  %p81_p0 = scmp.lt.u32.totalorder %s77_s0, %s129_s1 }
  0x8b   :  { %p83_p1 = pnand %p81_p0, %p78_p13 }
  0x8d   :  { %86 = shalt.err (!%p83_p1)
}
  0x8e   :  { %34 = dma.vmem_to_hbm [thread:$0]  %s32_s20, 128, %s129_s1, [#allocation4]  }
  0x8f   :  { %89 = dma.done.wait [#allocation4], 128  }
  0x90   :  { %90 = vsyncadd [#allocation4], 4294967168 }
  0x91   :  { %38 = vsyncpa [#allocation3], 1 }
  0x92   :  { %39 = vsyncpa [#allocation4], 1 }

</bundles_post_ra>
